<compile_context>
chip_gen: v5e
topology: v5e:2x2
jax: 0.10.0
libtpu: 0.0.40
codegen_flags: <defaults>
</compile_context>

<pallas_src>
import functools
import math

import jax
import jax.numpy as jnp
from jax.experimental import pallas as pl
from jax.experimental.pallas import tpu as pltpu


_LANE = 128
_VMEM_TILE_BUDGET = 44 * 1024 * 1024   # double-buffered tile budget, v7x-safe
_VMEM_LIMIT_BYTES = 48 * 1024 * 1024   # scoped VMEM limit; <= v7x 64 MiB per TC


def _round_up(x: int, m: int) -> int:
    return (x + m - 1) // m * m


def _sublane(dtype) -> int:
    # f32 -> 8 rows, bf16 -> 16, int8/fp8 -> 32 (sub-32-bit packs along sublanes).
    return max(8, 32 // jnp.dtype(dtype).itemsize)


def _divisor_tile(dim: int, pref: int, align: int = _LANE) -> int:
    """Largest t <= pref with dim % t == 0 and (t % align == 0 or t == dim)."""
    if dim <= pref:
        return dim
    t = (pref // align) * align
    while t >= align:
        if dim % t == 0:
            return t
        t -= align
    # TODO(synk): pathological dims (no lane-aligned divisor) fall back to the
    # full dim as a single block; pad offline if this ever exceeds VMEM.
    return dim


# --------------------------------------------------------------------------- #
# Kernels
# --------------------------------------------------------------------------- #
def _linear_kernel_f32_out(x_ref, w_ref, b_ref, o_ref, *, mxu_dtype):
    # x: (tm, tk)  w: (tk, tn)  b: (1, tn)  o: (tm, tn) f32, accumulated in place.
    k = pl.program_id(2)

    @pl.when(k == 0)
    def _():
        # Bias added exactly once, as the accumulator's initial value.
        o_ref[...] = jnp.broadcast_to(b_ref[...].astype(jnp.float32), o_ref.shape)

    o_ref[...] += jnp.dot(
        x_ref[...].astype(mxu_dtype),
        w_ref[...].astype(mxu_dtype),
        preferred_element_type=jnp.float32,
    )


def _linear_kernel_lowp_out(x_ref, w_ref, b_ref, o_ref, acc_ref, *, mxu_dtype):
    # Lower-precision output: keep an f32 VMEM accumulator, cast at finalize.
    k = pl.program_id(2)

    @pl.when(k == 0)
    def _():
        acc_ref[...] = jnp.zeros_like(acc_ref)

    acc_ref[...] += jnp.dot(
        x_ref[...].astype(mxu_dtype),
        w_ref[...].astype(mxu_dtype),
        preferred_element_type=jnp.float32,
    )

    @pl.when(k == pl.num_programs(2) - 1)
    def _():
        o_ref[...] = (acc_ref[...] + b_ref[...].astype(jnp.float32)).astype(o_ref.dtype)


# --------------------------------------------------------------------------- #
# Parameter init / one-time layout preparation (off the hot path)
# --------------------------------------------------------------------------- #
def init_linear_params(key, in_features, out_features, bias=True, dtype=jnp.float32):
    """Xavier-uniform weight (torch layout (out, in)), zero bias — matches the module."""
    bound = math.sqrt(6.0 / (in_features + out_features))
    w = jax.random.uniform(
        key, (out_features, in_features), dtype=jnp.float32, minval=-bound, maxval=bound
    ).astype(dtype)
    b = jnp.zeros((out_features,), dtype=dtype) if bias else None
    return w, b


def prepare_linear_params(weight, bias=None):
    """Do ONCE at init time: pre-transpose weight to (K, N) and lane-pad N.

    Removes the per-call HBM pad/transpose of the weight from the hot path.
    """
    out_features, in_features = weight.shape
    n_pad = _round_up(out_features, _LANE)
    w_kn = jnp.transpose(weight)                      # (K, N)
    if n_pad != out_features:
        w_kn = jnp.pad(w_kn, ((0, 0), (0, n_pad - out_features)))
    if bias is None:
        b = jnp.zeros((n_pad,), dtype=weight.dtype)
    elif n_pad != out_features:
        b = jnp.pad(bias, (0, n_pad - out_features))
    else:
        b = bias
    return w_kn, b.reshape(1, n_pad), out_features


# --------------------------------------------------------------------------- #
# Forward
# --------------------------------------------------------------------------- #
def linear_pallas(x, w_kn, b_row, out_features, *, tm=512, tn=512, tk=1024,
                  mxu_dtype=None):
    """y = x @ W^T + b with W pre-laid-out as w_kn = W.T (lane-padded on N)."""
    *lead, in_features = x.shape
    k_dim, n_pad = w_kn.shape
    assert k_dim == in_features, "weight/input feature mismatch"

    out_dtype = x.dtype
    if mxu_dtype is None:
        # Preserve exact f32 nn.Linear numerics for f32 params; feed the MXU
        # bf16 natively whenever either operand is already bf16 (v5e/v6e/v7x
        # MXUs are bf16-native).  Force with mxu_dtype=jnp.bfloat16 if desired.
        mxu_dtype = (jnp.float32
                     if (x.dtype == jnp.float32 and w_kn.dtype == jnp.float32)
                     else jnp.bfloat16)

    m = int(math.prod(lead)) if lead else 1
    x2d = x.reshape(m, in_features)

    # ---- tile selection -----------------------------------------------------
    sub = _sublane(x.dtype)                     # dtype-aware sublane alignment
    tm = max(sub, min(tm, _round_up(m, sub)))
    tm = _round_up(tm, sub)
    # Shrink tm while more than half of the last M block would be padding.
    while tm > sub and 2 * (_round_up(m, tm) - m) > tm:
        tm = max(sub, _round_up(tm // 2, sub))
    tn = _divisor_tile(n_pad, tn)
    tk = _divisor_tile(in_features, tk)

    use_scratch = out_dtype != jnp.float32

    def _footprint(tm_, tn_, tk_):
        bx = jnp.dtype(x.dtype).itemsize
        bw = jnp.dtype(w_kn.dtype).itemsize
        bb = jnp.dtype(b_row.dtype).itemsize
        bo = jnp.dtype(out_dtype).itemsize
        f = 2 * (tm_ * tk_ * bx + tk_ * tn_ * bw + tn_ * bb)   # double-buffered ins
        f += 2 * tm_ * tn_ * bo                                 # double-buffered out
        if use_scratch:
            f += tm_ * tn_ * 4
        return f

    # VMEM guard: keep double-buffered footprint under a v7x-safe budget.
    for _ in range(8):
        if _footprint(tm, tn, tk) <= _VMEM_TILE_BUDGET:
            break
        if tk > _LANE:
            tk = _divisor_tile(in_features, max(_LANE, tk // 2))
        elif tn > _LANE:
            tn = _divisor_tile(n_pad, max(_LANE, tn // 2))
        elif tm > sub:
            tm = max(sub, _round_up(tm // 2, sub))
        else:
            break

    m_pad = _round_up(m, tm)

    # Megacore (v7x, 2 TCs): keep >= 2 blocks across the parallel (i, j) axes
    # when the shapes allow it, so both TensorCores get work.
    if (m_pad // tm) * (n_pad // tn) == 1:
        if tn >= 2 * _LANE and tn % (2 * _LANE) == 0:
            tn //= 2
        elif tm % (2 * sub) == 0:
            tm //= 2

    grid = (m_pad // tm, n_pad // tn, in_features // tk)

    # Only x's M dimension is ever padded on the hot path (K uses exact tiles,
    # the weight's N was padded once at prepare time).
    x_p = x2d if m_pad == m else jnp.pad(x2d, ((0, m_pad - m), (0, 0)))

    if use_scratch:
        kernel = functools.partial(_linear_kernel_lowp_out, mxu_dtype=mxu_dtype)
        scratch = [pltpu.VMEM((tm, tn), jnp.float32)]
    else:
        kernel = functools.partial(_linear_kernel_f32_out, mxu_dtype=mxu_dtype)
        scratch = []

    cost = pl.CostEstimate(
        flops=2 * m * in_features * out_features,
        transcendentals=0,
        bytes_accessed=(
            (n_pad // tn) * m_pad * in_features * jnp.dtype(x.dtype).itemsize   # x re-reads
            + (m_pad // tm) * in_features * n_pad * jnp.dtype(w_kn.dtype).itemsize  # W re-reads
            + m_pad * n_pad * jnp.dtype(out_dtype).itemsize
        ),
    )

    out = pl.pallas_call(
        kernel,
        out_shape=jax.ShapeDtypeStruct((m_pad, n_pad), out_dtype),
        grid_spec=pltpu.PrefetchScalarGridSpec(
            num_scalar_prefetch=0,
            grid=grid,
            in_specs=[
                pl.BlockSpec((tm, tk), lambda i, j, k: (i, k)),   # x tile
                pl.BlockSpec((tk, tn), lambda i, j, k: (k, j)),   # weight tile (K, N)
                pl.BlockSpec((1, tn), lambda i, j, k: (0, j)),    # bias tile
            ],
            out_specs=pl.BlockSpec((tm, tn), lambda i, j, k: (i, j)),
            scratch_shapes=scratch,
        ),
        compiler_params=pltpu.CompilerParams(
            dimension_semantics=("parallel", "parallel", "arbitrary"),
            vmem_limit_bytes=_VMEM_LIMIT_BYTES,
        ),
        cost_estimate=cost,
    )(x_p, w_kn, b_row)

    out = out[:m, :out_features]
    return out.reshape(*lead, out_features)


# --------------------------------------------------------------------------- #
# Self-check
# --------------------------------------------------------------------------- #
if __name__ == "__main__":
    key = jax.random.PRNGKey(0)
    k_x, k_w, k_x2, k_w2, k_x3, k_w3 = jax.random.split(key, 6)

    # 1) Small f32 shapes consistent with the Conformer module.
    batch, seq, in_features, out_features = 2, 8, 32, 64
    x = jax.random.normal(k_x, (batch, seq, in_features), dtype=jnp.float32)
    w, b = init_linear_params(k_w, in_features, out_features)
    w_kn, b_row, n_out = prepare_linear_params(w, b)

    y = jax.block_until_ready(linear_pallas(x, w_kn, b_row, n_out))
    y_ref = x @ w.T + b
    assert y.shape == (batch, seq, out_features)
    assert jnp.allclose(y, y_ref, atol=1e-5, rtol=1e-5)

    # 2) Larger f32 shape exercising a multi-block (i, j, k) grid + M padding.
    x2 = jax.random.normal(k_x2, (4, 160, 384), dtype=jnp.float32)
    w2, b2 = init_linear_params(k_w2, 384, 512)
    w2_kn, b2_row, n2_out = prepare_linear_params(w2, b2)
    y2 = jax.block_until_ready(linear_pallas(x2, w2_kn, b2_row, n2_out))
    y2_ref = x2 @ w2.T + b2
    assert jnp.allclose(y2, y2_ref, atol=1e-4, rtol=1e-4)

    # 3) bf16 parameters + bf16 activations: exercises the bf16 MXU feed and
    #    the scratch-accumulator (low-precision output) kernel path.
    x3 = jax.random.normal(k_x3, (2, 64, 256), dtype=jnp.float32).astype(jnp.bfloat16)
    w3, b3 = init_linear_params(k_w3, 256, 384, dtype=jnp.bfloat16)
    w3_kn, b3_row, n3_out = prepare_linear_params(w3, b3)
    y3 = jax.block_until_ready(linear_pallas(x3, w3_kn, b3_row, n3_out))
    y3_ref = (x3.astype(jnp.float32) @ w3.T.astype(jnp.float32)
              + b3.astype(jnp.float32))
    assert y3.dtype == jnp.bfloat16
    assert jnp.allclose(y3.astype(jnp.float32), y3_ref, atol=2e-2, rtol=2e-2)

    print("KERNEL_OK")
</pallas_src>

<mosaic_0001>
module attributes {stable_mosaic.version = 11 : i64} {
  func.func @_linear_kernel_f32_out(%arg0: i32, %arg1: i32, %arg2: i32, %arg3: memref<8x32xf32, #tpu.memory_space<vmem>>, %arg4: memref<32x128xf32, #tpu.memory_space<vmem>>, %arg5: memref<1x128xf32, #tpu.memory_space<vmem>>, %arg6: memref<8x128xf32, #tpu.memory_space<vmem>>) attributes {dimension_semantics = [#tpu.dimension_semantics<parallel>, #tpu.dimension_semantics<parallel>, #tpu.dimension_semantics<arbitrary>], iteration_bounds = array<i64: 2, 1, 1>, scalar_prefetch = 0 : i64, scratch_operands = 0 : i64, tpu.core_type = #tpu.core_type<tc>, window_params = [{transform_indices = @transform_0, window_bounds = array<i64: 8, 32>}, {transform_indices = @transform_1, window_bounds = array<i64: 32, 128>}, {transform_indices = @transform_2, window_bounds = array<i64: 1, 128>}, {transform_indices = @transform_3, window_bounds = array<i64: 8, 128>}]} {
    %c0_i32 = arith.constant 0 : i32
    %0 = arith.cmpi eq, %arg2, %c0_i32 : i32
    %1 = arith.extui %0 : i1 to i32
    %c0_i32_0 = arith.constant 0 : i32
    %2 = arith.cmpi ne, %1, %c0_i32_0 : i32
    scf.if %2 {
      %c0_8 = arith.constant 0 : index
      %c0_9 = arith.constant 0 : index
      %9 = vector.load %arg5[%c0_8, %c0_9] : memref<1x128xf32, #tpu.memory_space<vmem>>, vector<1x128xf32>
      %10 = vector.shape_cast %9 : vector<1x128xf32> to vector<1x128xf32>
      %11 = vector.broadcast %10 : vector<1x128xf32> to vector<8x128xf32>
      %c0_10 = arith.constant 0 : index
      %c0_11 = arith.constant 0 : index
      %12 = vector.load %arg6[%c0_10, %c0_11] : memref<8x128xf32, #tpu.memory_space<vmem>>, vector<8x128xf32>
      tpu.vector_store %arg6[%c0_10, %c0_11], %11 {strides = array<i32>} : memref<8x128xf32, #tpu.memory_space<vmem>>, vector<8x128xf32>,
    } else {
    }
    %c0 = arith.constant 0 : index
    %c0_1 = arith.constant 0 : index
    %3 = vector.load %arg6[%c0, %c0_1] : memref<8x128xf32, #tpu.memory_space<vmem>>, vector<8x128xf32>
    %c0_2 = arith.constant 0 : index
    %c0_3 = arith.constant 0 : index
    %4 = vector.load %arg3[%c0_2, %c0_3] : memref<8x32xf32, #tpu.memory_space<vmem>>, vector<8x32xf32>
    %c0_4 = arith.constant 0 : index
    %c0_5 = arith.constant 0 : index
    %5 = vector.load %arg4[%c0_4, %c0_5] : memref<32x128xf32, #tpu.memory_space<vmem>>, vector<32x128xf32>
    %cst = arith.constant dense<0.000000e+00> : vector<8x128xf32>
    %6 = tpu.matmul %4, %5, %cst {dimension_numbers = #tpu.dot_dimension_numbers<[1], [0], [0], [1], [0, 0, 1, 1], [], []>} : vector<8x32xf32>, vector<32x128xf32>, vector<8x128xf32> -> vector<8x128xf32>
    %7 = arith.addf %3, %6 : vector<8x128xf32>
    %c0_6 = arith.constant 0 : index
    %c0_7 = arith.constant 0 : index
    %8 = vector.load %arg6[%c0_6, %c0_7] : memref<8x128xf32, #tpu.memory_space<vmem>>, vector<8x128xf32>
    tpu.vector_store %arg6[%c0_6, %c0_7], %7 {strides = array<i32>} : memref<8x128xf32, #tpu.memory_space<vmem>>, vector<8x128xf32>,
    return
  }
  func.func @transform_0(%arg0: i32, %arg1: i32, %arg2: i32) -> (i32, i32) {
    %c0_i32 = arith.constant 0 : i32
    return %arg0, %arg2 : i32, i32
  }
  func.func @transform_1(%arg0: i32, %arg1: i32, %arg2: i32) -> (i32, i32) {
    %c0_i32 = arith.constant 0 : i32
    return %arg2, %arg1 : i32, i32
  }
  func.func @transform_2(%arg0: i32, %arg1: i32, %arg2: i32) -> (i32, i32) {
    %c0_i32 = arith.constant 0 : i32
    %c0_i32_0 = arith.constant 0 : i32
    return %c0_i32, %arg1 : i32, i32
  }
  func.func @transform_3(%arg0: i32, %arg1: i32, %arg2: i32) -> (i32, i32) {
    %c0_i32 = arith.constant 0 : i32
    return %arg0, %arg1 : i32, i32
  }
}

</mosaic_0001>

<bundles_post_ra>
// kernel: tpu_custom_call.1
= control target key start
LH: loop header
LB: loop body
LE: loop exit
PB: predicated region body
PF: predicated region fallthrough
CT: control target
= control target key end

     0   :  { %8 = vsyncpa [#allocation3], 0  ;;  %s832_s0 = inlined_call_operand.hbm [shape: f32[16,32], index: 0, kind: input, shape index: {}]   ;;  %s833_s1 = inlined_call_operand.hbm [shape: f32[32,128], index: 1, kind: input, shape index: {}]   ;;  %s834_s2 = inlined_call_operand.vmem [shape: f32[1,128], index: 2, kind: input, shape index: {}]   ;;  %s835_s3 = inlined_call_operand.hbm [shape: f32[16,128], index: 3, kind: output, shape index: {}]  }
   0x1   :  { %10 = vsyncpa [#allocation3 + $0x1], 0 }
   0x2   :  { %11 = vsyncpa [#allocation6], 0 }
   0x3   :  { %12 = vsyncpa [#allocation4], 0 }
   0x4   :  { %14 = vsyncpa [#allocation4 + $0x1], 0  ;;  %s686_s12 = smov 0   ;;  %s688_s13 = smov 0  }
   0x5   :  { %s690_s14 = smov 0   ;;  %s692_s15 = smov 0  }
   0x6   :  { %s694_s16 = smov 0   ;;  %s696_s17 = smov 0  }
   0x7 LB: > { %s422_s18 = sadd.s32 4294967295, %s661_s17   ;;  %p424_p0 = scmp.ge.s32.totalorder %s661_s17, 1  ;;  %s661_s17 = sphi %s696_s17, %s20_s17   ;;  %s657_s16 = sphi %s694_s16, %s846_s16   ;;  %s653_s15 = sphi %s692_s15, %s845_s15   ;;  %s649_s14 = sphi %s690_s14, %s844_s14   ;;  %s645_s13 = sphi %s688_s13, %s843_s13   ;;  %s641_s12 = sphi %s686_s12, %s842_s12  }
   0x8   : > { %p718_p1 = scmp.eq.s32.totalorder %s422_s18, 0  ;;  %p154_p2 = scmp.lt.s32.totalorder %s661_s17, 3 }
   0x9   : > { %s169_s22 = sshll.u32 %s833_s1, 4  ;;  %s663_s24 = smov [#allocation5]   ;;  %s170_s22 = int_to_ptr.hbm [resolvable:$true] %s169_s22 }
   0xa   : > { %p726_p3 = pnand %p424_p0, %p154_p2  ;;  %s171_s25 = sshll.u32 %s663_s24, 4  ;;  %s172_s25 = int_to_ptr.vmem [resolvable:$true] %s171_s25 }
   0xb   : > { %p427_p6 = scmp.ge.s32.totalorder %s661_s17, 2  ;;  %s664_s26 = smov 128  }
   0xc   : > { %p447_p4 = pneg %p726_p3  ;;  %s665_s27 = smov 8  }
   0xd   : > { %s423_s28 = sadd.s32 4294967294, %s661_s17   ;;  %s39_s29 = sadd.s32 1, %s657_s16 }
   0xe   : > { %p448_p5 = pnand %p447_p4, %p718_p1  ;;  %s48_s30 = sadd.s32 1, %s649_s14 }
   0xf   : > { %p41_p7 = scmp.ge.s32.totalorder %s39_s29, 2  ;;  %p55_p8 = scmp.ne.s32.totalorder %s649_s14, %s645_s13 }
  0x10   : > { %450 = dma.hbm_to_vmem [thread:$0]  (!%p448_p5), %s170_s22, 512, %s172_s25, [#allocation6], %s664_s26, %s664_s26, %s665_s27  }
  0x11   : > { %p56_p9 = scmp.eq.s32.totalorder %s661_s17, 0  ;;  %p61_p10 = scmp.ne.s32.totalorder %s645_s13, %s641_s12 }
  0x12   : > { %s848_s29 = smov (%p41_p7, %s39_s29), 0  ;;  %p141_p13 = scmp.eq.s32.totalorder %s422_s18, 1 }
  0x13   : > { %p745_p11 = por %p56_p9, %p55_p8  ;;  %p751_p12 = por %p718_p1, %p61_p10 }
  0x14   : > { %s43_s6 = ssub.s32 %s657_s16, %s848_s29  ;;  %p147_p2 = scmp.eq.s32.totalorder %s423_s28, 1 }
  0x15   : > { %p46_p0 = scmp.eq.s32.totalorder %s43_s6, 0  ;;  %p757_p4 = por %p141_p13, %p55_p8 }
  0x16   : > { %p460_p5 = scmp.lt.s32.totalorder %s661_s17, 2  ;;  %p765_p7 = por %p147_p2, %p61_p10 }
  0x17   : > { %s763_s8 = scalar_select %p46_p0, %s649_s14, %s48_s30  }
  0x18   : > { %s191_s10 = sand.u32 1, %s649_s14   ;;  %s429_s20 = sshll.u32 %s657_s16, 3 }
  0x19   : > { %s428_s11 = sshll.u32 %s191_s10, 3  ;;  %s200_s18 = scalar_lea.hbm %s832_s0, %s429_s20 }
  0x1a   : > { %s195_s24 = scalar_lea.vmem [#allocation2], %s428_s11  ;;  %s202_s26 = sshll.u32 %s200_s18, 4  ;;  %s203_s26 = int_to_ptr.hbm [resolvable:$true] %s202_s26 }
  0x1b   : > { %s204_s25 = sshll.u32 %s195_s24, 4  ;;  %p452_p8 = pnand %p460_p5, %p745_p11  ;;  %s205_s25 = int_to_ptr.vmem [resolvable:$true] %s204_s25 }
  0x1c   : > { %s192_s27 = scalar_lea.sflag [#allocation3], %s191_s10  ;;  %213 = sbr.rel (%p726_p3) target bundleno = 175 (0xaf), region = 32 }
  0x1d   : > { %454 = dma.hbm_to_vmem [thread:$0]  (!%p452_p8), %s203_s26, 128, %s205_s25, %s192_s27  }
  0x1e   : > { %s779_s28 = sand.u32 (!%p726_p3), 1, %s645_s13  }
  0x1f   : > { %s431_s30 = sshll.u32 (!%p726_p3), %s779_s28, 3  ;;  %s216_s6 = scalar_lea.sflag (!%p726_p3), [#allocation3], %s779_s28 }
  0x20   : > { %s219_s11 = scalar_lea.vmem (!%p726_p3), [#allocation2], %s431_s30 }
  0x21   : > { %628 = dma.done.wait (%p751_p12), %s216_s6, 128  }
  0x22   : > { %630 = vsyncadd (%p751_p12), %s216_s6, 4294967168 }
  0x23   : > { %632 = dma.done.wait (%p718_p1), [#allocation6], 512  }
  0x24   : > { %634 = vsyncadd (%p718_p1), [#allocation6], 4294966784  ;;  %v269_v0 = vld [vmem:[#allocation5 + $0x18] sm:$0xff]  ;;  %v268_v1 = vld [vmem:[#allocation5 + $0x10] sm:$0xff]  ;;  %vm270_vm0 = vcmask 261120   ;;  %s436_s23 = sshll.u32 %s653_s15, 3 }
  0x25   : > { %286 = vmatpush.msra.mxu0 %v269_v0  ;;  %v267_v2 = vld [vmem:[#allocation5 + $0x8] sm:$0xff]  ;;  %v266_v3 = vld [vmem:[#allocation5] sm:$0xff]  ;;  %v265_v4 = vld [vmem:[%s219_s11] sm:$0xff]  ;;  %s308_s19 = scalar_lea.hbm %s835_s3, %s436_s23  ;;  %s250_s21 = scalar_lea.vmem [#allocation7], %s431_s30 }
  0x26   : > { %v514_v5 = vld [vmem:[%s834_s2] ss:$0 sm:$0xff]  ;;  %s310_s22 = sshll.u32 %s250_s21, 4  ;;  %s312_s18 = sshll.u32 %s308_s19, 4  ;;  %s311_s22 = int_to_ptr.vmem [resolvable:$true] %s310_s22  ;;  %s313_s18 = int_to_ptr.hbm [resolvable:$true] %s312_s18 }
  0x27   : > { %287 = vmatpush.msra.mxu0 %v268_v1  ;;  %s297_s24 = scalar_lea.sflag [#allocation4], %s779_s28  ;;  %s589_s25 = sshra.s32 %s313_s18, 4  ;;  %s590_s25 = int_to_ptr.hbm [resolvable:$true] %s589_s25 }
  0x28   : > { %s591_s15 = scalar_lea.hbm %s590_s25, 8  ;;  %s595_s6 = scalar_lea.hbm %s835_s3, 16 }
  0x29   : > { %288 = vmatpush.msra.mxu0 %v267_v2  ;;  %p592_p1 = scmp.ne.s32.totalorder %s590_s25, %s591_s15  ;;  %p596_p10 = scmp.lt.s32.totalorder %s590_s25, %s835_s3 }
  0x2a   : > { %p597_p11 = scmp.lt.s32.totalorder %s595_s6, %s591_s15 }
  0x2b   : > { %289 = vmatpush.msra.mxu0 %v266_v3  ;;  %p593_p3 = pnand %p592_p1, %p757_p4 }
  0x2c   : > { %434 = vmatmul.msk.f32.vlgmr.msra.gmra.mxu0 %vm270_vm0, %v265_v4  ;;  %p598_p12 = por %p597_p11, %p596_p10 }
  0x2d   : > { %p594_p9 = pneg %p593_p3 }
  0x2f   : > { %p599_p13 = pnand %p598_p12, %p594_p9 }
  0xa9   : > { %v291_v6 = vpop.f32.mrf.mxu0 }
  0xaa   : > { %v294_v7 = vadd.f32 %v514_v5, %v291_v6 }
  0xac   : > { %295 = vst [vmem:[%s250_s21] sm:$0xff] %v294_v7 }
  0xad   : > { %602 = shalt.err (!%p599_p13)
}
  0xae   : > { %445 = dma.vmem_to_hbm [thread:$0]  (%p757_p4), %s311_s22, 128, %s313_s18, %s297_s24  }
  0xaf PF: > { %s324_s28 = sand.u32 1, %s641_s12   ;;  %p456_p0 = pnand %p427_p6, %p765_p7 }
  0xb0   : > { %s325_s23 = scalar_lea.sflag [#allocation4], %s324_s28 }
  0xb1   : > { %p457_p2 = pneg %p456_p0 }
  0xb3   : > { %636 = dma.done.wait (%p457_p2), %s325_s23, 128  }
  0xb4   : > { %638 = vsyncadd (%p457_p2), %s325_s23, 4294967168  ;;  %s20_s17 = sadd.s32 1, %s661_s17   ;;  %s842_s12 = smov %s645_s13 }
  0xb5   : > { %p17_p5 = scmp.ge.s32.totalorder %s20_s17, 4   ;;  %s843_s13 = smov %s649_s14 }
  0xb6   : > { %s844_s14 = smov %s763_s8  ;;  %s845_s15 = smov %s657_s16 }
  0xb7   : > { %s846_s16 = smov %s848_s29  ;;  %19 = sbr.rel (!%p17_p5) target bundleno = 7 (0x7), region = 89 }
  0xbc   :  { %331 = vsyncpa [#allocation3], 1 }
  0xbd   :  { %333 = vsyncpa [#allocation3 + $0x1], 1 }
  0xbe   :  { %334 = vsyncpa [#allocation6], 1 }
  0xbf   :  { %335 = vsyncpa [#allocation4], 1 }
  0xc0   :  { %337 = vsyncpa [#allocation4 + $0x1], 1 }

</bundles_post_ra>
